<compile_context>
chip_gen: v5e
topology: v5e:2x2
jax: 0.10.0
libtpu: 0.0.40
codegen_flags: <defaults>
</compile_context>

<pallas_src>
import functools

import jax
import jax.numpy as jnp
from jax import lax
from jax.experimental import pallas as pl
from jax.experimental.pallas import tpu as pltpu


def _softplus(x):
    # numerically stable softplus
    return jnp.where(x > 0, x + jnp.log1p(jnp.exp(-x)), jnp.log1p(jnp.exp(x)))


def _round_up(n, m):
    return (n + m - 1) // m * m


def softplus_rnn_kernel(x_ref, a_hbm_ref, o_ref, a_vmem, h_ref, a_sem,
                        *, dt, tt, chain_slices, precision):
    # grid = (batch_blocks, time_blocks); the time axis (last, "arbitrary")
    # carries the recurrence through the persistent h_ref VMEM scratch.
    t_blk = pl.program_id(1)

    @pl.when(t_blk == 0)
    def _():
        # New batch block: (re)load the folded transition matrix A into its
        # single VMEM buffer and zero the hidden carry.  A lives in HBM
        # (memory_space=pl.ANY) so the auto-pipeline never double-buffers it;
        # the reload costs H*H*4 bytes per batch block (negligible).
        cp = pltpu.make_async_copy(a_hbm_ref, a_vmem, a_sem)
        cp.start()
        h_ref[...] = jnp.zeros_like(h_ref)
        cp.wait()

    def step(i, hs):
        a = a_vmem[...]  # read per step: MXU RHS streams from VMEM, keeps vregs free
        new_hs = []
        for (lo, sz), h in zip(chain_slices, hs):
            xt = x_ref[lo:lo + sz, i, :]              # sublane-strided load
            hx = jnp.dot(h, a, preferred_element_type=jnp.float32,
                         precision=precision)
            # dt is a Python float at trace time: skip the mul when dt == 1.
            h_new = hx + xt if dt == 1.0 else hx + dt * xt
            o_ref[lo:lo + sz, i, :] = h_new           # sublane-strided store
            new_hs.append(h_new)
        return tuple(new_hs)

    # Independent sub-batch chains: their per-step matmuls have no mutual
    # dependence, so the scheduler interleaves them and hides MXU latency.
    hs0 = tuple(h_ref[lo:lo + sz, :] for lo, sz in chain_slices)
    hs = lax.fori_loop(0, tt, step, hs0, unroll=min(tt, 8))
    for (lo, sz), h in zip(chain_slices, hs):
        h_ref[lo:lo + sz, :] = h


def softplus_rnn(x, q, w, dt=1.0, *, bt_cap=256, tt_cap=256,
                 precision=lax.Precision.HIGHEST):
    """x: (B, T, H) float; q: (H, H) orthogonal; w: (H,). Returns (B, T, H)."""
    B, T, H = x.shape
    dtype = jnp.float32
    x = x.astype(dtype)
    q = q.astype(dtype)
    w = w.astype(dtype)
    dt = float(dt)

    # Fold the whole linear recurrence operator once (outside the kernel):
    #   A = I - dt * Q^T @ diag(softplus(w)) @ Q   (computed in full f32)
    s = _softplus(w)
    a = jnp.eye(H, dtype=dtype) - dt * jnp.matmul(
        q.T, s[:, None] * q, precision=lax.Precision.HIGHEST)

    # ---- batch tile ---------------------------------------------------------
    if B <= 8:
        bt = B                                        # tiny batch: one block
    else:
        vreg_cap = max(8, (32768 // H) // 8 * 8)      # h carry <= ~32 vregs
        bt = min(_round_up(B, 8), bt_cap, vreg_cap)
        if _round_up(B, 8) >= 16:                     # >=2 blocks -> v7x megacore
            bt = min(bt, _round_up(pl.cdiv(B, 2), 8))
        bt = max(bt, 8)
    grid_b = pl.cdiv(B, bt)                           # partial last block OK

    if bt >= 64 and bt % 4 == 0:
        n_chains = 4
    elif bt >= 16 and bt % 2 == 0:
        n_chains = 2
    else:
        n_chains = 1
    csz = bt // n_chains
    chain_slices = tuple((c * csz, csz) for c in range(n_chains))

    # ---- time tile / VMEM budget -------------------------------------------
    # Conservative slab budget that fits v7x (64 MiB physical VMEM) with
    # headroom; A (single buffer) and the hidden carry are subtracted first.
    slab_budget = 32 * 1024 * 1024
    fixed = H * H * 4 + bt * H * 4
    avail = max(slab_budget - fixed, 2 * 1024 * 1024)
    per_step = 2 * 2 * bt * H * 4                     # x + out, double-buffered
    tt_hi = min(tt_cap, max(8, (avail // per_step) // 8 * 8))
    if T <= tt_hi:
        tt = T                                        # exact: zero padded steps
    else:
        best = None
        for cand in range(8, tt_hi + 1, 8):           # minimize padded steps
            waste = pl.cdiv(T, cand) * cand - T
            if best is None or (waste, -cand) < best:
                best = (waste, -cand)
        tt = -best[1]
    grid_t = pl.cdiv(T, tt)

    slab = 2 * 2 * bt * tt * H * 4
    vmem_limit = int(min(max(fixed + slab + (8 << 20), 32 << 20), 56 << 20))

    kernel = functools.partial(softplus_rnn_kernel, dt=dt, tt=tt,
                               chain_slices=chain_slices, precision=precision)

    return pl.pallas_call(
        kernel,
        out_shape=jax.ShapeDtypeStruct((B, T, H), dtype),
        grid_spec=pltpu.PrefetchScalarGridSpec(
            num_scalar_prefetch=0,
            grid=(grid_b, grid_t),
            in_specs=[
                # x tiled directly in native (B, T, H): no pad/transpose pass.
                pl.BlockSpec((bt, tt, H), lambda b, t: (b, t, 0)),
                # folded A stays in HBM; DMA'd manually (single VMEM copy).
                pl.BlockSpec(memory_space=pl.ANY),
            ],
            out_specs=pl.BlockSpec((bt, tt, H), lambda b, t: (b, t, 0)),
            scratch_shapes=[
                pltpu.VMEM((H, H), dtype),            # A (single buffer)
                pltpu.VMEM((bt, H), dtype),           # hidden-state carry
                pltpu.SemaphoreType.DMA,              # A load semaphore
            ],
        ),
        compiler_params=pltpu.CompilerParams(
            # Batch blocks are independent -> megacore-shardable on v7x;
            # time axis carries the recurrence -> sequential ("arbitrary").
            dimension_semantics=("parallel", "arbitrary"),
            vmem_limit_bytes=vmem_limit,
        ),
    )(x, a)


def softplus_rnn_ref(x, q, w, dt=1.0):
    # Faithful (unfolded) reference matching the PyTorch module, with explicit
    # f32 matmul precision so the comparison is apples-to-apples.
    s = _softplus(w)

    def step(h, xt):
        z = jnp.matmul(jnp.matmul(h, q.T, precision=lax.Precision.HIGHEST) * s,
                       q, precision=lax.Precision.HIGHEST)
        h_new = h + dt * (xt - z)
        return h_new, h_new

    h0 = jnp.zeros((x.shape[0], x.shape[2]), x.dtype)
    _, hs = jax.lax.scan(step, h0, jnp.transpose(x, (1, 0, 2)))
    return jnp.transpose(hs, (1, 0, 2))


if __name__ == "__main__":
    def run_case(case, B, T, H, dt, atol, rtol):
        key = jax.random.fold_in(jax.random.PRNGKey(0), case)
        k_x, k_w, k_q = jax.random.split(key, 3)
        x = jax.random.normal(k_x, (B, T, H), dtype=jnp.float32)
        w = jax.random.normal(k_w, (H,), dtype=jnp.float32)      # CustomLinearLayer weight
        m = jax.random.normal(k_q, (H, H), dtype=jnp.float32)
        q_mat, _ = jnp.linalg.qr(m)                              # CustomOrthogonalLayer weight

        out = jax.block_until_ready(softplus_rnn(x, q_mat, w, dt=dt))
        ref = softplus_rnn_ref(x, q_mat, w, dt=dt)
        assert out.shape == (B, T, H)
        assert jnp.allclose(out, ref, atol=atol, rtol=rtol), (
            f"mismatch vs reference at B={B} T={T} H={H}")

    # Small, module-consistent shape (rec1_size acts as the hidden size).
    run_case(0, B=2, T=8, H=32, dt=1.0, atol=1e-4, rtol=5e-4)
    # Larger shape: exercises multiple batch blocks, a partial batch tile and
    # the interleaved sub-batch chains.  dt < 1 keeps the recurrence stable.
    run_case(1, B=24, T=40, H=128, dt=0.1, atol=5e-4, rtol=1e-3)

    print("KERNEL_OK")
</pallas_src>

<mosaic_0001>
module attributes {stable_mosaic.version = 11 : i64} {
  func.func @softplus_rnn_kernel(%arg0: i32, %arg1: i32, %arg2: memref<2x8x32xf32, #tpu.memory_space<vmem>>, %arg3: memref<32x32xf32, #tpu.memory_space<any>>, %arg4: memref<2x8x32xf32, #tpu.memory_space<vmem>>, %arg5: memref<32x32xf32, #tpu.memory_space<vmem>>, %arg6: memref<2x32xf32, #tpu.memory_space<vmem>>, %arg7: memref<!tpu.dma_semaphore, #tpu.memory_space<semaphore_mem>>) attributes {dimension_semantics = [#tpu.dimension_semantics<parallel>, #tpu.dimension_semantics<arbitrary>], iteration_bounds = array<i64: 1, 1>, scalar_prefetch = 0 : i64, scratch_operands = 3 : i64, tpu.core_type = #tpu.core_type<tc>, window_params = [{transform_indices = @transform_0, window_bounds = array<i64: 2, 8, 32>}, {}, {transform_indices = @transform_2, window_bounds = array<i64: 2, 8, 32>}]} {
    %c0_i32 = arith.constant 0 : i32
    %0 = arith.cmpi eq, %arg1, %c0_i32 : i32
    %1 = arith.extui %0 : i1 to i32
    %c0_i32_0 = arith.constant 0 : i32
    %2 = arith.cmpi ne, %1, %c0_i32_0 : i32
    scf.if %2 {
      tpu.enqueue_dma source(%arg3 : memref<32x32xf32, #tpu.memory_space<any>>) target(%arg5 : memref<32x32xf32, #tpu.memory_space<vmem>>) target_semaphore(%arg7 : memref<!tpu.dma_semaphore, #tpu.memory_space<semaphore_mem>>)
      %cst_60 = arith.constant 0.000000e+00 : f32
      %85 = vector.broadcast %cst_60 : f32 to vector<2x32xf32>
      %c0_61 = arith.constant 0 : index
      %c0_62 = arith.constant 0 : index
      %86 = vector.load %arg6[%c0_61, %c0_62] : memref<2x32xf32, #tpu.memory_space<vmem>>, vector<2x32xf32>
      tpu.vector_store %arg6[%c0_61, %c0_62], %85 {strides = array<i32>} : memref<2x32xf32, #tpu.memory_space<vmem>>, vector<2x32xf32>,
      tpu.wait_dma2 semaphore(%arg7 : memref<!tpu.dma_semaphore, #tpu.memory_space<semaphore_mem>>) src(%arg3 : memref<32x32xf32, #tpu.memory_space<any>>) dst(%arg5 : memref<32x32xf32, #tpu.memory_space<vmem>>)
    } else {
    }
    %c0 = arith.constant 0 : index
    %c0_1 = arith.constant 0 : index
    %3 = vector.load %arg6[%c0, %c0_1] : memref<2x32xf32, #tpu.memory_space<vmem>>, vector<2x32xf32>
    %c0_i32_2 = arith.constant 0 : i32
    %c0_3 = arith.constant 0 : index
    %c0_4 = arith.constant 0 : index
    %4 = vector.load %arg5[%c0_3, %c0_4] : memref<32x32xf32, #tpu.memory_space<vmem>>, vector<32x32xf32>
    %c0_5 = arith.constant 0 : index
    %5 = arith.index_cast %c0_i32_2 : i32 to index
    %c0_6 = arith.constant 0 : index
    %6 = vector.load %arg2[%c0_5, %5, %c0_6] : memref<2x8x32xf32, #tpu.memory_space<vmem>>, vector<2x1x32xf32>
    %7 = vector.shape_cast %6 : vector<2x1x32xf32> to vector<2x32xf32>
    %cst = arith.constant dense<0.000000e+00> : vector<2x32xf32>
    %8 = tpu.matmul %3, %4, %cst {dimension_numbers = #tpu.dot_dimension_numbers<[1], [0], [0], [1], [0, 0, 1, 1], [], []>, precision = #tpu.contract_precision<fp32>} : vector<2x32xf32>, vector<32x32xf32>, vector<2x32xf32> -> vector<2x32xf32>
    %9 = arith.addf %8, %7 : vector<2x32xf32>
    %c0_7 = arith.constant 0 : index
    %10 = arith.index_cast %c0_i32_2 : i32 to index
    %c0_8 = arith.constant 0 : index
    %11 = vector.load %arg4[%c0_7, %10, %c0_8] : memref<2x8x32xf32, #tpu.memory_space<vmem>>, vector<2x1x32xf32>
    %12 = vector.shape_cast %11 : vector<2x1x32xf32> to vector<2x32xf32>
    %13 = vector.shape_cast %9 : vector<2x32xf32> to vector<2x1x32xf32>
    tpu.vector_store %arg4[%c0_7, %10, %c0_8], %13 {strides = array<i32>} : memref<2x8x32xf32, #tpu.memory_space<vmem>>, vector<2x1x32xf32>,
    %c1_i32 = arith.constant 1 : i32
    %c0_9 = arith.constant 0 : index
    %c0_10 = arith.constant 0 : index
    %14 = vector.load %arg5[%c0_9, %c0_10] : memref<32x32xf32, #tpu.memory_space<vmem>>, vector<32x32xf32>
    %c0_11 = arith.constant 0 : index
    %15 = arith.index_cast %c1_i32 : i32 to index
    %c0_12 = arith.constant 0 : index
    %16 = vector.load %arg2[%c0_11, %15, %c0_12] : memref<2x8x32xf32, #tpu.memory_space<vmem>>, vector<2x1x32xf32>
    %17 = vector.shape_cast %16 : vector<2x1x32xf32> to vector<2x32xf32>
    %cst_13 = arith.constant dense<0.000000e+00> : vector<2x32xf32>
    %18 = tpu.matmul %9, %14, %cst_13 {dimension_numbers = #tpu.dot_dimension_numbers<[1], [0], [0], [1], [0, 0, 1, 1], [], []>, precision = #tpu.contract_precision<fp32>} : vector<2x32xf32>, vector<32x32xf32>, vector<2x32xf32> -> vector<2x32xf32>
    %19 = arith.addf %18, %17 : vector<2x32xf32>
    %c0_14 = arith.constant 0 : index
    %20 = arith.index_cast %c1_i32 : i32 to index
    %c0_15 = arith.constant 0 : index
    %21 = vector.load %arg4[%c0_14, %20, %c0_15] : memref<2x8x32xf32, #tpu.memory_space<vmem>>, vector<2x1x32xf32>
    %22 = vector.shape_cast %21 : vector<2x1x32xf32> to vector<2x32xf32>
    %23 = vector.shape_cast %19 : vector<2x32xf32> to vector<2x1x32xf32>
    tpu.vector_store %arg4[%c0_14, %20, %c0_15], %23 {strides = array<i32>} : memref<2x8x32xf32, #tpu.memory_space<vmem>>, vector<2x1x32xf32>,
    %c2_i32 = arith.constant 2 : i32
    %c0_16 = arith.constant 0 : index
    %c0_17 = arith.constant 0 : index
    %24 = vector.load %arg5[%c0_16, %c0_17] : memref<32x32xf32, #tpu.memory_space<vmem>>, vector<32x32xf32>
    %c0_18 = arith.constant 0 : index
    %25 = arith.index_cast %c2_i32 : i32 to index
    %c0_19 = arith.constant 0 : index
    %26 = vector.load %arg2[%c0_18, %25, %c0_19] : memref<2x8x32xf32, #tpu.memory_space<vmem>>, vector<2x1x32xf32>
    %27 = vector.shape_cast %26 : vector<2x1x32xf32> to vector<2x32xf32>
    %cst_20 = arith.constant dense<0.000000e+00> : vector<2x32xf32>
    %28 = tpu.matmul %19, %24, %cst_20 {dimension_numbers = #tpu.dot_dimension_numbers<[1], [0], [0], [1], [0, 0, 1, 1], [], []>, precision = #tpu.contract_precision<fp32>} : vector<2x32xf32>, vector<32x32xf32>, vector<2x32xf32> -> vector<2x32xf32>
    %29 = arith.addf %28, %27 : vector<2x32xf32>
    %c0_21 = arith.constant 0 : index
    %30 = arith.index_cast %c2_i32 : i32 to index
    %c0_22 = arith.constant 0 : index
    %31 = vector.load %arg4[%c0_21, %30, %c0_22] : memref<2x8x32xf32, #tpu.memory_space<vmem>>, vector<2x1x32xf32>
    %32 = vector.shape_cast %31 : vector<2x1x32xf32> to vector<2x32xf32>
    %33 = vector.shape_cast %29 : vector<2x32xf32> to vector<2x1x32xf32>
    tpu.vector_store %arg4[%c0_21, %30, %c0_22], %33 {strides = array<i32>} : memref<2x8x32xf32, #tpu.memory_space<vmem>>, vector<2x1x32xf32>,
    %c3_i32 = arith.constant 3 : i32
    %c0_23 = arith.constant 0 : index
    %c0_24 = arith.constant 0 : index
    %34 = vector.load %arg5[%c0_23, %c0_24] : memref<32x32xf32, #tpu.memory_space<vmem>>, vector<32x32xf32>
    %c0_25 = arith.constant 0 : index
    %35 = arith.index_cast %c3_i32 : i32 to index
    %c0_26 = arith.constant 0 : index
    %36 = vector.load %arg2[%c0_25, %35, %c0_26] : memref<2x8x32xf32, #tpu.memory_space<vmem>>, vector<2x1x32xf32>
    %37 = vector.shape_cast %36 : vector<2x1x32xf32> to vector<2x32xf32>
    %cst_27 = arith.constant dense<0.000000e+00> : vector<2x32xf32>
    %38 = tpu.matmul %29, %34, %cst_27 {dimension_numbers = #tpu.dot_dimension_numbers<[1], [0], [0], [1], [0, 0, 1, 1], [], []>, precision = #tpu.contract_precision<fp32>} : vector<2x32xf32>, vector<32x32xf32>, vector<2x32xf32> -> vector<2x32xf32>
    %39 = arith.addf %38, %37 : vector<2x32xf32>
    %c0_28 = arith.constant 0 : index
    %40 = arith.index_cast %c3_i32 : i32 to index
    %c0_29 = arith.constant 0 : index
    %41 = vector.load %arg4[%c0_28, %40, %c0_29] : memref<2x8x32xf32, #tpu.memory_space<vmem>>, vector<2x1x32xf32>
    %42 = vector.shape_cast %41 : vector<2x1x32xf32> to vector<2x32xf32>
    %43 = vector.shape_cast %39 : vector<2x32xf32> to vector<2x1x32xf32>
    tpu.vector_store %arg4[%c0_28, %40, %c0_29], %43 {strides = array<i32>} : memref<2x8x32xf32, #tpu.memory_space<vmem>>, vector<2x1x32xf32>,
    %c4_i32 = arith.constant 4 : i32
    %c0_30 = arith.constant 0 : index
    %c0_31 = arith.constant 0 : index
    %44 = vector.load %arg5[%c0_30, %c0_31] : memref<32x32xf32, #tpu.memory_space<vmem>>, vector<32x32xf32>
    %c0_32 = arith.constant 0 : index
    %45 = arith.index_cast %c4_i32 : i32 to index
    %c0_33 = arith.constant 0 : index
    %46 = vector.load %arg2[%c0_32, %45, %c0_33] : memref<2x8x32xf32, #tpu.memory_space<vmem>>, vector<2x1x32xf32>
    %47 = vector.shape_cast %46 : vector<2x1x32xf32> to vector<2x32xf32>
    %cst_34 = arith.constant dense<0.000000e+00> : vector<2x32xf32>
    %48 = tpu.matmul %39, %44, %cst_34 {dimension_numbers = #tpu.dot_dimension_numbers<[1], [0], [0], [1], [0, 0, 1, 1], [], []>, precision = #tpu.contract_precision<fp32>} : vector<2x32xf32>, vector<32x32xf32>, vector<2x32xf32> -> vector<2x32xf32>
    %49 = arith.addf %48, %47 : vector<2x32xf32>
    %c0_35 = arith.constant 0 : index
    %50 = arith.index_cast %c4_i32 : i32 to index
    %c0_36 = arith.constant 0 : index
    %51 = vector.load %arg4[%c0_35, %50, %c0_36] : memref<2x8x32xf32, #tpu.memory_space<vmem>>, vector<2x1x32xf32>
    %52 = vector.shape_cast %51 : vector<2x1x32xf32> to vector<2x32xf32>
    %53 = vector.shape_cast %49 : vector<2x32xf32> to vector<2x1x32xf32>
    tpu.vector_store %arg4[%c0_35, %50, %c0_36], %53 {strides = array<i32>} : memref<2x8x32xf32, #tpu.memory_space<vmem>>, vector<2x1x32xf32>,
    %c5_i32 = arith.constant 5 : i32
    %c0_37 = arith.constant 0 : index
    %c0_38 = arith.constant 0 : index
    %54 = vector.load %arg5[%c0_37, %c0_38] : memref<32x32xf32, #tpu.memory_space<vmem>>, vector<32x32xf32>
    %c0_39 = arith.constant 0 : index
    %55 = arith.index_cast %c5_i32 : i32 to index
    %c0_40 = arith.constant 0 : index
    %56 = vector.load %arg2[%c0_39, %55, %c0_40] : memref<2x8x32xf32, #tpu.memory_space<vmem>>, vector<2x1x32xf32>
    %57 = vector.shape_cast %56 : vector<2x1x32xf32> to vector<2x32xf32>
    %cst_41 = arith.constant dense<0.000000e+00> : vector<2x32xf32>
    %58 = tpu.matmul %49, %54, %cst_41 {dimension_numbers = #tpu.dot_dimension_numbers<[1], [0], [0], [1], [0, 0, 1, 1], [], []>, precision = #tpu.contract_precision<fp32>} : vector<2x32xf32>, vector<32x32xf32>, vector<2x32xf32> -> vector<2x32xf32>
    %59 = arith.addf %58, %57 : vector<2x32xf32>
    %c0_42 = arith.constant 0 : index
    %60 = arith.index_cast %c5_i32 : i32 to index
    %c0_43 = arith.constant 0 : index
    %61 = vector.load %arg4[%c0_42, %60, %c0_43] : memref<2x8x32xf32, #tpu.memory_space<vmem>>, vector<2x1x32xf32>
    %62 = vector.shape_cast %61 : vector<2x1x32xf32> to vector<2x32xf32>
    %63 = vector.shape_cast %59 : vector<2x32xf32> to vector<2x1x32xf32>
    tpu.vector_store %arg4[%c0_42, %60, %c0_43], %63 {strides = array<i32>} : memref<2x8x32xf32, #tpu.memory_space<vmem>>, vector<2x1x32xf32>,
    %c6_i32 = arith.constant 6 : i32
    %c0_44 = arith.constant 0 : index
    %c0_45 = arith.constant 0 : index
    %64 = vector.load %arg5[%c0_44, %c0_45] : memref<32x32xf32, #tpu.memory_space<vmem>>, vector<32x32xf32>
    %c0_46 = arith.constant 0 : index
    %65 = arith.index_cast %c6_i32 : i32 to index
    %c0_47 = arith.constant 0 : index
    %66 = vector.load %arg2[%c0_46, %65, %c0_47] : memref<2x8x32xf32, #tpu.memory_space<vmem>>, vector<2x1x32xf32>
    %67 = vector.shape_cast %66 : vector<2x1x32xf32> to vector<2x32xf32>
    %cst_48 = arith.constant dense<0.000000e+00> : vector<2x32xf32>
    %68 = tpu.matmul %59, %64, %cst_48 {dimension_numbers = #tpu.dot_dimension_numbers<[1], [0], [0], [1], [0, 0, 1, 1], [], []>, precision = #tpu.contract_precision<fp32>} : vector<2x32xf32>, vector<32x32xf32>, vector<2x32xf32> -> vector<2x32xf32>
    %69 = arith.addf %68, %67 : vector<2x32xf32>
    %c0_49 = arith.constant 0 : index
    %70 = arith.index_cast %c6_i32 : i32 to index
    %c0_50 = arith.constant 0 : index
    %71 = vector.load %arg4[%c0_49, %70, %c0_50] : memref<2x8x32xf32, #tpu.memory_space<vmem>>, vector<2x1x32xf32>
    %72 = vector.shape_cast %71 : vector<2x1x32xf32> to vector<2x32xf32>
    %73 = vector.shape_cast %69 : vector<2x32xf32> to vector<2x1x32xf32>
    tpu.vector_store %arg4[%c0_49, %70, %c0_50], %73 {strides = array<i32>} : memref<2x8x32xf32, #tpu.memory_space<vmem>>, vector<2x1x32xf32>,
    %c7_i32 = arith.constant 7 : i32
    %c0_51 = arith.constant 0 : index
    %c0_52 = arith.constant 0 : index
    %74 = vector.load %arg5[%c0_51, %c0_52] : memref<32x32xf32, #tpu.memory_space<vmem>>, vector<32x32xf32>
    %c0_53 = arith.constant 0 : index
    %75 = arith.index_cast %c7_i32 : i32 to index
    %c0_54 = arith.constant 0 : index
    %76 = vector.load %arg2[%c0_53, %75, %c0_54] : memref<2x8x32xf32, #tpu.memory_space<vmem>>, vector<2x1x32xf32>
    %77 = vector.shape_cast %76 : vector<2x1x32xf32> to vector<2x32xf32>
    %cst_55 = arith.constant dense<0.000000e+00> : vector<2x32xf32>
    %78 = tpu.matmul %69, %74, %cst_55 {dimension_numbers = #tpu.dot_dimension_numbers<[1], [0], [0], [1], [0, 0, 1, 1], [], []>, precision = #tpu.contract_precision<fp32>} : vector<2x32xf32>, vector<32x32xf32>, vector<2x32xf32> -> vector<2x32xf32>
    %79 = arith.addf %78, %77 : vector<2x32xf32>
    %c0_56 = arith.constant 0 : index
    %80 = arith.index_cast %c7_i32 : i32 to index
    %c0_57 = arith.constant 0 : index
    %81 = vector.load %arg4[%c0_56, %80, %c0_57] : memref<2x8x32xf32, #tpu.memory_space<vmem>>, vector<2x1x32xf32>
    %82 = vector.shape_cast %81 : vector<2x1x32xf32> to vector<2x32xf32>
    %83 = vector.shape_cast %79 : vector<2x32xf32> to vector<2x1x32xf32>
    tpu.vector_store %arg4[%c0_56, %80, %c0_57], %83 {strides = array<i32>} : memref<2x8x32xf32, #tpu.memory_space<vmem>>, vector<2x1x32xf32>,
    %c8_i32 = arith.constant 8 : i32
    %c0_58 = arith.constant 0 : index
    %c0_59 = arith.constant 0 : index
    %84 = vector.load %arg6[%c0_58, %c0_59] : memref<2x32xf32, #tpu.memory_space<vmem>>, vector<2x32xf32>
    tpu.vector_store %arg6[%c0_58, %c0_59], %79 {strides = array<i32>} : memref<2x32xf32, #tpu.memory_space<vmem>>, vector<2x32xf32>,
    return
  }
  func.func @transform_0(%arg0: i32, %arg1: i32) -> (i32, i32, i32) {
    %c0_i32 = arith.constant 0 : i32
    %c0_i32_0 = arith.constant 0 : i32
    return %arg0, %arg1, %c0_i32 : i32, i32, i32
  }
  func.func @transform_2(%arg0: i32, %arg1: i32) -> (i32, i32, i32) {
    %c0_i32 = arith.constant 0 : i32
    %c0_i32_0 = arith.constant 0 : i32
    return %arg0, %arg1, %c0_i32 : i32, i32, i32
  }
}

</mosaic_0001>

<bundles_post_ra>
// kernel: tpu_custom_call.1
= control target key start
LH: loop header
LB: loop body
LE: loop exit
PB: predicated region body
PF: predicated region fallthrough
CT: control target
= control target key end

     0   :  { %7 = vsyncpa [#allocation6], 0  ;;  %s2075_s0 = inlined_call_operand.hbm [shape: f32[2,8,32], index: 0, kind: input, shape index: {}]   ;;  %s2076_s1 = inlined_call_operand.hbm [shape: f32[32,32], index: 1, kind: input, shape index: {}]   ;;  %s2077_s2 = inlined_call_operand.hbm [shape: f32[2,8,32], index: 2, kind: output, shape index: {}]  }
   0x1   :  { %8 = vsyncpa [#allocation7], 0  ;;  %s13_s11 = sshll.u32 %s2075_s0, 4  ;;  %s1789_s12 = smov [#allocation5]   ;;  %s14_s11 = int_to_ptr.hbm [resolvable:$true] %s13_s11 }
   0x2   :  { %s15_s13 = sshll.u32 %s1789_s12, 4  ;;  %s1790_s14 = smov 128   ;;  %s16_s13 = int_to_ptr.vmem [resolvable:$true] %s15_s13 }
   0x3   :  { %s1791_s15 = smov 8  }
   0x4   :  { %21 = dma.hbm_to_vmem [thread:$0]  %s14_s11, 256, %s16_s13, [#allocation6], %s1790_s14, %s1790_s14, %s1791_s15  }
   0x5   :  { %1783 = dma.done.wait [#allocation6], 256  }
   0x6   :  { %1784 = vsyncadd [#allocation6], 4294967040  ;;  %s37_s18 = sshll.u32 %s2076_s1, 4  ;;  %vm43_vm0 = vcmask 254976   ;;  %s1792_s19 = smov [#allocation2]   ;;  %v1793_v0 = vmov 0.0   ;;  %s38_s18 = int_to_ptr.hbm [resolvable:$true] %s37_s18 }
   0x7   :  { %s39_s0 = sshll.u32 %s1792_s19, 4  ;;  %44 = vst.msk [vmem:[#allocation3] sm:$0x3] %vm43_vm0, %v1793_v0  ;;  %s40_s0 = int_to_ptr.vmem [resolvable:$true] %s39_s0 }
   0x8   :  { %42 = dma.hbm_to_vmem [thread:$0]  %s38_s18, 512, %s40_s0, [#allocation4] }
   0x9   :  { %1785 = dma.done.wait [#allocation4], 512 }
   0xa   :  { %1786 = vsyncadd [#allocation4], 4294966784  ;;  %vm61_vm1 = vcmask 261120   ;;  %v52_v1 = vld [vmem:[#allocation2 + $0x18] sm:$0xff]  ;;  %v51_v2 = vld [vmem:[#allocation2 + $0x10] sm:$0xff]  ;;  %vm58_vm2 = vcmask 1041409  }
   0xb   :  { %v50_v3 = vld [vmem:[#allocation2 + $0x8] sm:$0xff]  ;;  %v1820_v4 = vand.u32 4294901760, %v52_v1  ;;  %v1822_v5 = vand.u32 4294901760, %v51_v2  ;;  %v49_v7 = vld [vmem:[#allocation2] sm:$0xff]  ;;  %vm253_vm3 = vcmask 253952   ;;  %s1794_s1 = smov [#allocation8]  }
   0xc   :  { %v1824_v6 = vand.u32 4294901760, %v50_v3  ;;  %v1826_v9 = vand.u32 4294901760, %v49_v7  ;;  %v54_v32 = vld [vmem:[#allocation5 + $0x8] sm:$0x1]  ;;  %v53_v34 = vld [vmem:[#allocation5] sm:$0x1] }
   0xd   :  { %v1830_v11 = vsub.f32 %v52_v1, %v1820_v4  ;;  %78 = vmatpush.msra.mxu0 %v1820_v4  ;;  %v1834_v12 = vsub.f32 %v51_v2, %v1822_v5  ;;  %178 = vmatpush.msra.mxu3 %v1820_v4  ;;  %v57_v33 = vrot.slane %v54_v32, 7  ;;  %v261_v55 = vld [vmem:[#allocation5 + $0x9] sm:$0x1]  ;;  %v260_v57 = vld [vmem:[#allocation5 + $0x1] sm:$0x1]  ;;  %s1683_s20 = sshll.u32 %s1794_s1, 4  ;;  %s1684_s20 = int_to_ptr.vmem [resolvable:$true] %s1683_s20 }
   0xe   :  { %v48_v8 = vld [vmem:[#allocation3] sm:$0x3]  ;;  %v1838_v13 = vsub.f32 %v50_v3, %v1824_v6  ;;  %v1841_v15 = vsub.f32 %v49_v7, %v1826_v9  ;;  %v264_v56 = vrot.slane %v261_v55, 7  ;;  %v463_v32 = vld [vmem:[#allocation5 + $0x2] sm:$0x1]  ;;  %s1685_s23 = sshll.u32 %s2077_s2, 4  ;;  %s1686_s23 = int_to_ptr.hbm [resolvable:$true] %s1685_s23 }
   0xf   :  { %v63_v10 = vsel %vm61_vm1, %v48_v8, 0  ;;  %149 = vmatpush.msra.mxu2 %v1830_v11  ;;  %80 = vmatpush.msra.mxu0 %v1822_v5  ;;  %v1846_v16 = vand.u32 4294901760, %v1830_v11  ;;  %v1849_v17 = vand.u32 4294901760, %v1834_v12  ;;  %v59_v35 = vsel %vm58_vm2, %v57_v33, %v53_v34  ;;  %v666_v55 = vld [vmem:[#allocation5 + $0x3] sm:$0x1] }
  0x10   :  { %v85_v14 = vand.u32 4294901760, %v63_v10  ;;  %v1852_v19 = vand.u32 4294901760, %v1838_v13  ;;  %180 = vmatpush.msra.mxu3 %v1822_v5  ;;  %v1856_v20 = vand.u32 4294901760, %v1841_v15  ;;  %v265_v58 = vsel %vm58_vm2, %v264_v56, %v260_v57 }
  0x11   :  { %152 = vmatpush.msra.mxu2 %v1834_v12  ;;  %v109_v21 = vsub.f32 %v1830_v11, %v1846_v16  ;;  %82 = vmatpush.msra.mxu0 %v1824_v6  ;;  %v115_v22 = vsub.f32 %v1834_v12, %v1849_v17 }
  0x12   :  { %v86_v18 = vsub.f32 %v63_v10, %v85_v14  ;;  %v121_v23 = vsub.f32 %v1838_v13, %v1852_v19  ;;  %182 = vmatpush.msra.mxu3 %v1824_v6  ;;  %v127_v28 = vsub.f32 %v1841_v15, %v1856_v20 }
  0x13   :  { %v1867_v25 = vand.u32 4294901760, %v109_v21  ;;  %155 = vmatpush.msra.mxu2 %v1838_v13  ;;  %v1870_v26 = vand.u32 4294901760, %v115_v22  ;;  %84 = vmatpush.msra.mxu0 %v1826_v9 }
  0x14   :  { %v87_v24 = vand.u32 4294901760, %v86_v18  ;;  %184 = vmatpush.msra.mxu3 %v1826_v9  ;;  %v1879_v29 = vand.u32 4294901760, %v121_v23  ;;  %v1882_v31 = vand.u32 4294901760, %v127_v28  ;;  %v464_v28 = vld [vmem:[#allocation5 + $0xa] sm:$0x1] }
  0x15   :  { %207 = vmatpush.msrb.mxu0 %v1846_v16  ;;  %111 = vmatpush.msra.mxu1 %v1867_v25 }
  0x16   :  { %v88_v27 = vsub.f32 %v86_v18, %v87_v24  ;;  %158 = vmatpush.msra.mxu2 %v1841_v15  ;;  %188 = vmatmul.f32.vlgmr.msra.gmra.mxu3 %v87_v24 }
  0x17   :  { %161 = vmatmul.f32.vlgmr.msra.gmra.mxu2 %v86_v18  ;;  %117 = vmatpush.msra.mxu1 %v1870_v26 }
  0x18   :  { %v89_v30 = vand.u32 4294901760, %v88_v27  ;;  %211 = vmatpush.msrb.mxu0 %v1849_v17  ;;  %315 = vmatpush.msrb.mxu3 %v1867_v25 }
  0x19   :  { %123 = vmatpush.msra.mxu1 %v1879_v29  ;;  %282 = vmatpush.msrb.mxu2 %v1820_v4 }
  0x1a   :  { %90 = vmatmul.f32.vlgmr.msra.gmra.mxu0 %v89_v30  ;;  %321 = vmatpush.msrb.mxu3 %v1870_v26  ;;  %v467_v30 = vrot.slane %v464_v28, 7 }
  0x1b   :  { %215 = vmatpush.msrb.mxu0 %v1852_v19  ;;  %129 = vmatpush.msra.mxu1 %v1882_v31 }
  0x1c   :  { %284 = vmatpush.msrb.mxu2 %v1822_v5  ;;  %131 = vmatmul.f32.vlgmr.msra.gmra.mxu1 %v85_v14  ;;  %v468_v33 = vsel %vm58_vm2, %v467_v30, %v463_v32 }
  0x1d   :  { %219 = vmatpush.msrb.mxu0 %v1856_v20  ;;  %238 = vmatpush.msrb.mxu1 %v1820_v4 }
  0x1e   :  { %327 = vmatpush.msrb.mxu3 %v1879_v29  ;;  %286 = vmatpush.msrb.mxu2 %v1824_v6 }
  0x1f   :  { %353 = vmatpush.msra.mxu0 %v1830_v11  ;;  %240 = vmatpush.msrb.mxu1 %v1822_v5 }
  0x20   :  { %333 = vmatpush.msrb.mxu3 %v1882_v31  ;;  %288 = vmatpush.msrb.mxu2 %v1826_v9 }
  0x21   :  { %356 = vmatpush.msra.mxu0 %v1834_v12  ;;  %242 = vmatpush.msrb.mxu1 %v1824_v6 }
  0x22   :  { %221 = vmatmul.f32.vlgmr.msrb.gmra.mxu0 %v85_v14  ;;  %442 = vmatpush.msra.mxu3 %v1820_v4 }
  0x23   :  { %359 = vmatpush.msra.mxu0 %v1838_v13  ;;  %244 = vmatpush.msrb.mxu1 %v1826_v9 }
  0x24   :  { %444 = vmatpush.msra.mxu3 %v1822_v5  ;;  %246 = vmatmul.f32.vlgmr.msrb.gmra.mxu1 %v85_v14 }
  0x25   :  { %362 = vmatpush.msra.mxu0 %v1841_v15  ;;  %382 = vmatpush.msra.mxu1 %v1820_v4 }
  0x26   :  { %446 = vmatpush.msra.mxu3 %v1824_v6  ;;  %411 = vmatpush.msra.mxu2 %v1846_v16 }
  0x27   :  { %485 = vmatpush.msrb.mxu0 %v1820_v4  ;;  %384 = vmatpush.msra.mxu1 %v1822_v5 }
  0x28   :  { %448 = vmatpush.msra.mxu3 %v1826_v9  ;;  %415 = vmatpush.msra.mxu2 %v1849_v17 }
  0x29   :  { %487 = vmatpush.msrb.mxu0 %v1822_v5  ;;  %386 = vmatpush.msra.mxu1 %v1824_v6 }
  0x2a   :  { %419 = vmatpush.msra.mxu2 %v1852_v19 }
  0x2b   :  { %489 = vmatpush.msrb.mxu0 %v1824_v6  ;;  %388 = vmatpush.msra.mxu1 %v1826_v9 }
  0x2c   :  { %423 = vmatpush.msra.mxu2 %v1856_v20 }
  0x2d   :  { %518 = vmatpush.msrb.mxu1 %v1867_v25  ;;  %491 = vmatpush.msrb.mxu0 %v1826_v9 }
  0x2f   :  { %524 = vmatpush.msrb.mxu1 %v1870_v26 }
  0x31   :  { %530 = vmatpush.msrb.mxu1 %v1879_v29 }
  0x33   :  { %536 = vmatpush.msrb.mxu1 %v1882_v31 }
  0x97   :  { %v91_v36 = vpop.f32.mrf.mxu0 }
  0x98   :  { %v92_v37 = vadd.f32 %v91_v36, %v59_v35 }
  0x99   :  { %v132_v38 = vpop.f32.mrf.mxu1  ;;  %v189_v41 = vpop.f32.mrf.mxu3 }
  0x9a   :  { %v162_v39 = vpop.f32.mrf.mxu2  ;;  %v133_v40 = vadd.f32 %v132_v38, %v92_v37 }
  0x9c   :  { %v163_v42 = vadd.f32 %v162_v39, %v133_v40 }
  0x9e   :  { %v190_v44 = vadd.f32 %v189_v41, %v163_v42 }
  0x9f   :  { %v222_v43 = vpop.f32.mrf.mxu0 }
  0xa0   :  { %v223_v45 = vadd.f32 %v222_v43, %v190_v44 }
  0xa1   :  { %v247_v46 = vpop.f32.mrf.mxu1 }
  0xa2   :  { %v248_v47 = vadd.f32 %v247_v46, %v223_v45 }
  0xa4   :  { %v251_v48 = vrot.slane %v248_v47, 1  ;;  %254 = vst.msk [vmem:[#allocation8] sm:$0x1] %vm253_vm3, %v248_v47  ;;  %v267_v49 = vsel %vm61_vm1, %v248_v47, 0 }
  0xa5   :  { %v289_v50 = vand.u32 4294901760, %v267_v49 }
  0xa6   :  { %255 = vst.msk [vmem:[#allocation8 + $0x8] sm:$0x1] %vm253_vm3, %v251_v48 }
  0xa7   :  { %v290_v51 = vsub.f32 %v267_v49, %v289_v50  ;;  %335 = vmatmul.f32.vlgmr.msrb.gmra.mxu3 %v289_v50 }
  0xa8   :  { %585 = vmatpush.msrb.mxu3 %v1820_v4 }
  0xa9   :  { %365 = vmatmul.f32.vlgmr.msra.gmra.mxu0 %v290_v51  ;;  %v291_v52 = vand.u32 4294901760, %v290_v51 }
  0xaa   :  { %587 = vmatpush.msrb.mxu3 %v1822_v5  ;;  %614 = vmatpush.msra.mxu0 %v1846_v16 }
  0xab   :  { %392 = vmatmul.f32.vlgmr.msra.gmra.mxu1 %v291_v52  ;;  %v292_v53 = vsub.f32 %v290_v51, %v291_v52 }
  0xac   :  { %589 = vmatpush.msrb.mxu3 %v1824_v6  ;;  %645 = vmatpush.msra.mxu1 %v1820_v4 }
  0xad   :  { %v293_v54 = vand.u32 4294901760, %v292_v53  ;;  %618 = vmatpush.msra.mxu0 %v1849_v17  ;;  %v667_v53 = vld [vmem:[#allocation5 + $0xb] sm:$0x1] }
  0xae   :  { %591 = vmatpush.msrb.mxu3 %v1826_v9  ;;  %647 = vmatpush.msra.mxu1 %v1822_v5 }
  0xaf   :  { %294 = vmatmul.f32.vlgmr.msrb.gmra.mxu2 %v293_v54  ;;  %450 = vmatmul.f32.vlgmr.msra.gmra.mxu3 %v289_v50  ;;  %v670_v54 = vrot.slane %v667_v53, 7 }
  0xb0   :  { %556 = vmatpush.msrb.mxu2 %v1830_v11  ;;  %649 = vmatpush.msra.mxu1 %v1824_v6 }
  0xb1   :  { %622 = vmatpush.msra.mxu0 %v1852_v19  ;;  %721 = vmatpush.msra.mxu3 %v1867_v25  ;;  %v671_v56 = vsel %vm58_vm2, %v670_v54, %v666_v55 }
  0xb2   :  { %559 = vmatpush.msrb.mxu2 %v1834_v12  ;;  %651 = vmatpush.msra.mxu1 %v1826_v9 }
  0xb3   :  { %626 = vmatpush.msra.mxu0 %v1856_v20  ;;  %727 = vmatpush.msra.mxu3 %v1870_v26 }
  0xb4   :  { %562 = vmatpush.msrb.mxu2 %v1838_v13 }
  0xb5   :  { %733 = vmatpush.msra.mxu3 %v1879_v29 }
  0xb6   :  { %565 = vmatpush.msrb.mxu2 %v1841_v15 }
  0xb7   :  { %425 = vmatmul.f32.vlgmr.msra.gmra.mxu2 %v289_v50  ;;  %739 = vmatpush.msra.mxu3 %v1882_v31 }
  0xb8   :  { %688 = vmatpush.msra.mxu2 %v1820_v4 }
  0xba   :  { %690 = vmatpush.msra.mxu2 %v1822_v5 }
  0xbc   :  { %692 = vmatpush.msra.mxu2 %v1824_v6 }
  0xbe   :  { %694 = vmatpush.msra.mxu2 %v1826_v9 }
 0x126   :  { %v366_v63 = vpop.f32.mrf.mxu0 }
 0x128   :  { %v393_v1 = vpop.f32.mrf.mxu1 }
 0x12a   :  { %v336_v59 = vpop.f32.mrf.mxu3 }
 0x132   :  { %v295_v60 = vpop.f32.mrf.mxu2  ;;  %v451_v8 = vpop.f32.mrf.mxu3 }
 0x133   :  { %v296_v61 = vadd.f32 %v295_v60, %v265_v58 }
 0x135   :  { %v337_v62 = vadd.f32 %v336_v59, %v296_v61 }
 0x137   :  { %v367_v0 = vadd.f32 %v366_v63, %v337_v62 }
 0x139   :  { %v394_v2 = vadd.f32 %v393_v1, %v367_v0 }
 0x13a   :  { %v426_v3 = vpop.f32.mrf.mxu2 }
 0x13b   :  { %v427_v7 = vadd.f32 %v426_v3, %v394_v2 }
 0x13d   :  { %v452_v10 = vadd.f32 %v451_v8, %v427_v7 }
 0x13f   :  { %v455_v14 = vrot.slane %v452_v10, 1  ;;  %457 = vst.msk [vmem:[#allocation8 + $0x1] sm:$0x1] %vm253_vm3, %v452_v10  ;;  %v470_v18 = vsel %vm61_vm1, %v452_v10, 0 }
 0x140   :  { %v492_v21 = vand.u32 4294901760, %v470_v18 }
 0x141   :  { %458 = vst.msk [vmem:[#allocation8 + $0x9] sm:$0x1] %vm253_vm3, %v455_v14 }
 0x142   :  { %538 = vmatmul.f32.vlgmr.msrb.gmra.mxu1 %v492_v21  ;;  %v493_v22 = vsub.f32 %v470_v18, %v492_v21 }
 0x143   :  { %788 = vmatpush.msrb.mxu1 %v1820_v4 }
 0x144   :  { %568 = vmatmul.f32.vlgmr.msrb.gmra.mxu2 %v493_v22  ;;  %v494_v23 = vand.u32 4294901760, %v493_v22 }
 0x145   :  { %790 = vmatpush.msrb.mxu1 %v1822_v5  ;;  %817 = vmatpush.msrb.mxu2 %v1846_v16 }
 0x146   :  { %595 = vmatmul.f32.vlgmr.msrb.gmra.mxu3 %v494_v23  ;;  %v495_v24 = vsub.f32 %v493_v22, %v494_v23 }
 0x147   :  { %792 = vmatpush.msrb.mxu1 %v1824_v6  ;;  %848 = vmatpush.msrb.mxu3 %v1820_v4 }
 0x148   :  { %v496_v27 = vand.u32 4294901760, %v495_v24  ;;  %821 = vmatpush.msrb.mxu2 %v1849_v17 }
 0x149   :  { %794 = vmatpush.msrb.mxu1 %v1826_v9  ;;  %850 = vmatpush.msrb.mxu3 %v1822_v5 }
 0x14a   :  { %497 = vmatmul.f32.vlgmr.msrb.gmra.mxu0 %v496_v27  ;;  %653 = vmatmul.f32.vlgmr.msra.gmra.mxu1 %v492_v21 }
 0x14b   :  { %759 = vmatpush.msrb.mxu0 %v1830_v11  ;;  %852 = vmatpush.msrb.mxu3 %v1824_v6 }
 0x14c   :  { %825 = vmatpush.msrb.mxu2 %v1852_v19  ;;  %924 = vmatpush.msra.mxu1 %v1867_v25 }
 0x14d   :  { %762 = vmatpush.msrb.mxu0 %v1834_v12  ;;  %854 = vmatpush.msrb.mxu3 %v1826_v9 }
 0x14e   :  { %829 = vmatpush.msrb.mxu2 %v1856_v20  ;;  %930 = vmatpush.msra.mxu1 %v1870_v26 }
 0x14f   :  { %765 = vmatpush.msrb.mxu0 %v1838_v13 }
 0x150   :  { %936 = vmatpush.msra.mxu1 %v1879_v29 }
 0x151   :  { %768 = vmatpush.msrb.mxu0 %v1841_v15 }
 0x152   :  { %628 = vmatmul.f32.vlgmr.msra.gmra.mxu0 %v492_v21  ;;  %942 = vmatpush.msra.mxu1 %v1882_v31 }
 0x153   :  { %891 = vmatpush.msra.mxu0 %v1820_v4 }
 0x155   :  { %893 = vmatpush.msra.mxu0 %v1822_v5 }
 0x157   :  { %895 = vmatpush.msra.mxu0 %v1824_v6 }
 0x159   :  { %897 = vmatpush.msra.mxu0 %v1826_v9 }
 0x1bf   :  { %v539_v34 = vpop.f32.mrf.mxu1 }
 0x1c7   :  { %v498_v35 = vpop.f32.mrf.mxu0  ;;  %v569_v38 = vpop.f32.mrf.mxu2 }
 0x1c8   :  { %v499_v36 = vadd.f32 %v498_v35, %v468_v33  ;;  %v654_v44 = vpop.f32.mrf.mxu1 }
 0x1c9   :  { %v596_v40 = vpop.f32.mrf.mxu3 }
 0x1ca   :  { %v540_v37 = vadd.f32 %v539_v34, %v499_v36 }
 0x1cc   :  { %v570_v39 = vadd.f32 %v569_v38, %v540_v37 }
 0x1ce   :  { %v597_v41 = vadd.f32 %v596_v40, %v570_v39 }
 0x1cf   :  { %v629_v42 = vpop.f32.mrf.mxu0 }
 0x1d0   :  { %v630_v43 = vadd.f32 %v629_v42, %v597_v41 }
 0x1d2   :  { %v655_v45 = vadd.f32 %v654_v44, %v630_v43 }
 0x1d4   :  { %v658_v46 = vrot.slane %v655_v45, 1  ;;  %660 = vst.msk [vmem:[#allocation8 + $0x2] sm:$0x1] %vm253_vm3, %v655_v45  ;;  %v673_v47 = vsel %vm61_vm1, %v655_v45, 0 }
 0x1d5   :  { %v695_v48 = vand.u32 4294901760, %v673_v47 }
 0x1d6   :  { %661 = vst.msk [vmem:[#allocation8 + $0xa] sm:$0x1] %vm253_vm3, %v658_v46 }
 0x1d7   :  { %741 = vmatmul.f32.vlgmr.msra.gmra.mxu3 %v695_v48  ;;  %v696_v49 = vsub.f32 %v673_v47, %v695_v48 }
 0x1d8   :  { %991 = vmatpush.msra.mxu3 %v1820_v4 }
 0x1d9   :  { %771 = vmatmul.f32.vlgmr.msrb.gmra.mxu0 %v696_v49  ;;  %v697_v50 = vand.u32 4294901760, %v696_v49 }
 0x1da   :  { %993 = vmatpush.msra.mxu3 %v1822_v5  ;;  %1020 = vmatpush.msrb.mxu0 %v1846_v16 }
 0x1db   :  { %798 = vmatmul.f32.vlgmr.msrb.gmra.mxu1 %v697_v50  ;;  %v698_v51 = vsub.f32 %v696_v49, %v697_v50 }
 0x1dc   :  { %995 = vmatpush.msra.mxu3 %v1824_v6  ;;  %1051 = vmatpush.msrb.mxu1 %v1820_v4 }
 0x1dd   :  { %v699_v52 = vand.u32 4294901760, %v698_v51  ;;  %1024 = vmatpush.msrb.mxu0 %v1849_v17 }
 0x1de   :  { %997 = vmatpush.msra.mxu3 %v1826_v9  ;;  %1053 = vmatpush.msrb.mxu1 %v1822_v5 }
 0x1df   :  { %700 = vmatmul.f32.vlgmr.msra.gmra.mxu2 %v699_v52  ;;  %856 = vmatmul.f32.vlgmr.msrb.gmra.mxu3 %v695_v48 }
 0x1e0   :  { %962 = vmatpush.msra.mxu2 %v1830_v11  ;;  %1055 = vmatpush.msrb.mxu1 %v1824_v6 }
 0x1e1   :  { %1028 = vmatpush.msrb.mxu0 %v1852_v19  ;;  %1127 = vmatpush.msrb.mxu3 %v1867_v25 }
 0x1e2   :  { %965 = vmatpush.msra.mxu2 %v1834_v12  ;;  %1057 = vmatpush.msrb.mxu1 %v1826_v9 }
 0x1e3   :  { %1032 = vmatpush.msrb.mxu0 %v1856_v20  ;;  %1133 = vmatpush.msrb.mxu3 %v1870_v26 }
 0x1e4   :  { %968 = vmatpush.msra.mxu2 %v1838_v13 }
 0x1e5   :  { %1139 = vmatpush.msrb.mxu3 %v1879_v29 }
 0x1e6   :  { %971 = vmatpush.msra.mxu2 %v1841_v15 }
 0x1e7   :  { %831 = vmatmul.f32.vlgmr.msrb.gmra.mxu2 %v695_v48  ;;  %1145 = vmatpush.msrb.mxu3 %v1882_v31 }
 0x1e8   :  { %1094 = vmatpush.msrb.mxu2 %v1820_v4 }
 0x1ea   :  { %1096 = vmatpush.msrb.mxu2 %v1822_v5 }
 0x1ec   :  { %1098 = vmatpush.msrb.mxu2 %v1824_v6 }
 0x1ee   :  { %1100 = vmatpush.msrb.mxu2 %v1826_v9 }
 0x256   :  { %v772_v61 = vpop.f32.mrf.mxu0 }
 0x258   :  { %v799_v63 = vpop.f32.mrf.mxu1 }
 0x25a   :  { %v742_v57 = vpop.f32.mrf.mxu3 }
 0x262   :  { %v701_v58 = vpop.f32.mrf.mxu2  ;;  %v857_v3 = vpop.f32.mrf.mxu3 }
 0x263   :  { %v702_v59 = vadd.f32 %v701_v58, %v671_v56  ;;  %v1477_v58 = vld [vmem:[#allocation2 + $0x18] sm:$0xff] }
 0x265   :  { %v743_v60 = vadd.f32 %v742_v57, %v702_v59  ;;  %v1499_v59 = vand.u32 4294901760, %v1477_v58 }
 0x267   :  { %v773_v62 = vadd.f32 %v772_v61, %v743_v60  ;;  %v1476_v60 = vld [vmem:[#allocation2 + $0x10] sm:$0xff]  ;;  %v1529_v61 = vsub.f32 %v1477_v58, %v1499_v59 }
 0x269   :  { %v800_v0 = vadd.f32 %v799_v63, %v773_v62  ;;  %v1501_v62 = vand.u32 4294901760, %v1476_v60  ;;  %v1475_v63 = vld [vmem:[#allocation2 + $0x8] sm:$0xff] }
 0x26a   :  { %v832_v1 = vpop.f32.mrf.mxu2 }
 0x26b   :  { %v833_v2 = vadd.f32 %v832_v1, %v800_v0  ;;  %v1530_v0 = vand.u32 4294901760, %v1529_v61  ;;  %v1535_v1 = vsub.f32 %v1476_v60, %v1501_v62 }
 0x26d   :  { %v858_v7 = vadd.f32 %v857_v3, %v833_v2  ;;  %v1503_v2 = vand.u32 4294901760, %v1475_v63  ;;  %v1474_v3 = vld [vmem:[#allocation2] sm:$0xff] }
 0x26f   :  { %v861_v8 = vrot.slane %v858_v7, 1  ;;  %863 = vst.msk [vmem:[#allocation8 + $0x3] sm:$0x1] %vm253_vm3, %v858_v7  ;;  %v876_v10 = vsel %vm61_vm1, %v858_v7, 0  ;;  %v1531_v7 = vsub.f32 %v1529_v61, %v1530_v0 }
 0x270   :  { %v898_v14 = vand.u32 4294901760, %v876_v10 }
 0x271   :  { %864 = vst.msk [vmem:[#allocation8 + $0xb] sm:$0x1] %vm253_vm3, %v861_v8  ;;  %v1536_v8 = vand.u32 4294901760, %v1535_v1 }
 0x272   :  { %944 = vmatmul.f32.vlgmr.msra.gmra.mxu1 %v898_v14  ;;  %v899_v18 = vsub.f32 %v876_v10, %v898_v14  ;;  %v1541_v10 = vsub.f32 %v1475_v63, %v1503_v2 }
 0x273   :  { %1194 = vmatpush.msra.mxu1 %v1820_v4 }
 0x274   :  { %974 = vmatmul.f32.vlgmr.msra.gmra.mxu2 %v899_v18  ;;  %v900_v21 = vand.u32 4294901760, %v899_v18 }
 0x275   :  { %1196 = vmatpush.msra.mxu1 %v1822_v5  ;;  %1223 = vmatpush.msra.mxu2 %v1846_v16 }
 0x276   :  { %1001 = vmatmul.f32.vlgmr.msra.gmra.mxu3 %v900_v21  ;;  %v901_v22 = vsub.f32 %v899_v18, %v900_v21  ;;  %v1532_v18 = vand.u32 4294901760, %v1531_v7  ;;  %v1537_v21 = vsub.f32 %v1535_v1, %v1536_v8 }
 0x277   :  { %1198 = vmatpush.msra.mxu1 %v1824_v6  ;;  %1254 = vmatpush.msra.mxu3 %v1820_v4 }
 0x278   :  { %v902_v23 = vand.u32 4294901760, %v901_v22  ;;  %1227 = vmatpush.msra.mxu2 %v1849_v17  ;;  %v1542_v22 = vand.u32 4294901760, %v1541_v10 }
 0x279   :  { %1200 = vmatpush.msra.mxu1 %v1826_v9  ;;  %1256 = vmatpush.msra.mxu3 %v1822_v5 }
 0x27a   :  { %903 = vmatmul.f32.vlgmr.msra.gmra.mxu0 %v902_v23  ;;  %1059 = vmatmul.f32.vlgmr.msrb.gmra.mxu1 %v898_v14 }
 0x27b   :  { %1165 = vmatpush.msra.mxu0 %v1830_v11  ;;  %1258 = vmatpush.msra.mxu3 %v1824_v6 }
 0x27c   :  { %1231 = vmatpush.msra.mxu2 %v1852_v19  ;;  %1330 = vmatpush.msrb.mxu1 %v1867_v25  ;;  %v870_v25 = vld [vmem:[#allocation5 + $0xc] sm:$0x1] }
 0x27d   :  { %1168 = vmatpush.msra.mxu0 %v1834_v12  ;;  %1260 = vmatpush.msra.mxu3 %v1826_v9  ;;  %v873_v24 = vrot.slane %v870_v25, 7  ;;  %v1538_v25 = vand.u32 4294901760, %v1537_v21 }
 0x27e   :  { %1235 = vmatpush.msra.mxu2 %v1856_v20  ;;  %1336 = vmatpush.msrb.mxu1 %v1870_v26  ;;  %v869_v26 = vld [vmem:[#allocation5 + $0x4] sm:$0x1] }
 0x27f   :  { %1171 = vmatpush.msra.mxu0 %v1838_v13  ;;  %v874_v27 = vsel %vm58_vm2, %v873_v24, %v869_v26  ;;  %v1543_v24 = vsub.f32 %v1541_v10, %v1542_v22 }
 0x280   :  { %1342 = vmatpush.msrb.mxu1 %v1879_v29 }
 0x281   :  { %1174 = vmatpush.msra.mxu0 %v1841_v15 }
 0x282   :  { %1034 = vmatmul.f32.vlgmr.msrb.gmra.mxu0 %v898_v14  ;;  %1348 = vmatpush.msrb.mxu1 %v1882_v31  ;;  %v1505_v14 = vand.u32 4294901760, %v1474_v3 }
 0x283   :  { %1297 = vmatpush.msrb.mxu0 %v1820_v4 }
 0x284   :  { %v1547_v23 = vsub.f32 %v1474_v3, %v1505_v14 }
 0x285   :  { %1299 = vmatpush.msrb.mxu0 %v1822_v5 }
 0x286   :  { %v1548_v26 = vand.u32 4294901760, %v1547_v23 }
 0x287   :  { %1301 = vmatpush.msrb.mxu0 %v1824_v6 }
 0x289   :  { %1303 = vmatpush.msrb.mxu0 %v1826_v9 }
 0x2ef   :  { %v945_v28 = vpop.f32.mrf.mxu1 }
 0x2f7   :  { %v904_v29 = vpop.f32.mrf.mxu0  ;;  %v975_v33 = vpop.f32.mrf.mxu2 }
 0x2f8   :  { %v905_v30 = vadd.f32 %v904_v29, %v874_v27  ;;  %v1060_v38 = vpop.f32.mrf.mxu1  ;;  %v1544_v27 = vand.u32 4294901760, %v1543_v24 }
 0x2f9   :  { %v1002_v31 = vpop.f32.mrf.mxu3 }
 0x2fa   :  { %v946_v32 = vadd.f32 %v945_v28, %v905_v30  ;;  %v1549_v28 = vsub.f32 %v1547_v23, %v1548_v26  ;;  %v1276_v30 = vld [vmem:[#allocation5 + $0xe] sm:$0x1] }
 0x2fc   :  { %v976_v34 = vadd.f32 %v975_v33, %v946_v32  ;;  %v1550_v29 = vand.u32 4294901760, %v1549_v28  ;;  %v1279_v32 = vrot.slane %v1276_v30, 7  ;;  %v1275_v33 = vld [vmem:[#allocation5 + $0x6] sm:$0x1] }
 0x2fe   :  { %v1003_v35 = vadd.f32 %v1002_v31, %v976_v34  ;;  %v1280_v34 = vsel %vm58_vm2, %v1279_v32, %v1275_v33 }
 0x2ff   :  { %v1035_v36 = vpop.f32.mrf.mxu0 }
 0x300   :  { %v1036_v37 = vadd.f32 %v1035_v36, %v1003_v35 }
 0x302   :  { %v1061_v39 = vadd.f32 %v1060_v38, %v1036_v37 }
 0x304   :  { %v1064_v40 = vrot.slane %v1061_v39, 1  ;;  %1066 = vst.msk [vmem:[#allocation8 + $0x4] sm:$0x1] %vm253_vm3, %v1061_v39  ;;  %v1079_v41 = vsel %vm61_vm1, %v1061_v39, 0 }
 0x305   :  { %v1101_v42 = vand.u32 4294901760, %v1079_v41 }
 0x306   :  { %1067 = vst.msk [vmem:[#allocation8 + $0xc] sm:$0x1] %vm253_vm3, %v1064_v40 }
 0x307   :  { %1147 = vmatmul.f32.vlgmr.msrb.gmra.mxu3 %v1101_v42  ;;  %v1102_v43 = vsub.f32 %v1079_v41, %v1101_v42 }
 0x308   :  { %1397 = vmatpush.msrb.mxu3 %v1820_v4 }
 0x309   :  { %1177 = vmatmul.f32.vlgmr.msra.gmra.mxu0 %v1102_v43  ;;  %v1103_v44 = vand.u32 4294901760, %v1102_v43 }
 0x30a   :  { %1399 = vmatpush.msrb.mxu3 %v1822_v5  ;;  %1426 = vmatpush.msra.mxu0 %v1846_v16  ;;  %v1072_v16 = vld [vmem:[#allocation5 + $0x5] sm:$0x1] }
 0x30b   :  { %1204 = vmatmul.f32.vlgmr.msra.gmra.mxu1 %v1103_v44  ;;  %v1104_v45 = vsub.f32 %v1102_v43, %v1103_v44 }
 0x30c   :  { %1401 = vmatpush.msrb.mxu3 %v1824_v6  ;;  %1457 = vmatpush.msra.mxu1 %v1820_v4  ;;  %v1073_v4 = vld [vmem:[#allocation5 + $0xd] sm:$0x1] }
 0x30d   :  { %v1105_v46 = vand.u32 4294901760, %v1104_v45  ;;  %1430 = vmatpush.msra.mxu0 %v1849_v17 }
 0x30e   :  { %1403 = vmatpush.msrb.mxu3 %v1826_v9  ;;  %1459 = vmatpush.msra.mxu1 %v1822_v5  ;;  %v1076_v5 = vrot.slane %v1073_v4, 7 }
 0x30f   :  { %1106 = vmatmul.f32.vlgmr.msrb.gmra.mxu2 %v1105_v46  ;;  %1262 = vmatmul.f32.vlgmr.msra.gmra.mxu3 %v1101_v42 }
 0x310   :  { %1368 = vmatpush.msrb.mxu2 %v1830_v11  ;;  %1461 = vmatpush.msra.mxu1 %v1824_v6  ;;  %v1077_v11 = vsel %vm58_vm2, %v1076_v5, %v1072_v16 }
 0x311   :  { %1434 = vmatpush.msra.mxu0 %v1852_v19  ;;  %1533 = vmatpush.msra.mxu3 %v1532_v18 }
 0x312   :  { %1371 = vmatpush.msrb.mxu2 %v1834_v12  ;;  %1463 = vmatpush.msra.mxu1 %v1826_v9 }
 0x313   :  { %1438 = vmatpush.msra.mxu0 %v1856_v20  ;;  %1539 = vmatpush.msra.mxu3 %v1538_v25 }
 0x314   :  { %1374 = vmatpush.msrb.mxu2 %v1838_v13 }
 0x315   :  { %1545 = vmatpush.msra.mxu3 %v1544_v27 }
 0x316   :  { %1377 = vmatpush.msrb.mxu2 %v1841_v15 }
 0x317   :  { %1237 = vmatmul.f32.vlgmr.msra.gmra.mxu2 %v1101_v42  ;;  %1551 = vmatpush.msra.mxu3 %v1550_v29 }
 0x318   :  { %1500 = vmatpush.msra.mxu2 %v1499_v59 }
 0x31a   :  { %1502 = vmatpush.msra.mxu2 %v1501_v62 }
 0x31c   :  { %1504 = vmatpush.msra.mxu2 %v1503_v2 }
 0x31e   :  { %1506 = vmatpush.msra.mxu2 %v1505_v14 }
 0x386   :  { %v1178_v48 = vpop.f32.mrf.mxu0 }
 0x388   :  { %v1205_v49 = vpop.f32.mrf.mxu1 }
 0x38a   :  { %v1148_v17 = vpop.f32.mrf.mxu3 }
 0x392   :  { %v1107_v6 = vpop.f32.mrf.mxu2  ;;  %v1263_v51 = vpop.f32.mrf.mxu3 }
 0x393   :  { %v1108_v47 = vadd.f32 %v1107_v6, %v1077_v11 }
 0x395   :  { %v1149_v19 = vadd.f32 %v1148_v17, %v1108_v47  ;;  %v1479_v47 = vld [vmem:[#allocation5 + $0xf] sm:$0x1] }
 0x397   :  { %v1179_v12 = vadd.f32 %v1178_v48, %v1149_v19  ;;  %v1482_v19 = vrot.slane %v1479_v47, 7  ;;  %v1478_v48 = vld [vmem:[#allocation5 + $0x7] sm:$0x1] }
 0x399   :  { %v1206_v9 = vadd.f32 %v1205_v49, %v1179_v12  ;;  %v1483_v12 = vsel %vm58_vm2, %v1482_v19, %v1478_v48 }
 0x39a   :  { %v1238_v50 = vpop.f32.mrf.mxu2 }
 0x39b   :  { %v1239_v20 = vadd.f32 %v1238_v50, %v1206_v9 }
 0x39d   :  { %v1264_v13 = vadd.f32 %v1263_v51, %v1239_v20 }
 0x39f   :  { %v1267_v52 = vrot.slane %v1264_v13, 1  ;;  %1269 = vst.msk [vmem:[#allocation8 + $0x5] sm:$0x1] %vm253_vm3, %v1264_v13  ;;  %v1282_v15 = vsel %vm61_vm1, %v1264_v13, 0 }
 0x3a0   :  { %v1304_v53 = vand.u32 4294901760, %v1282_v15 }
 0x3a1   :  { %1270 = vst.msk [vmem:[#allocation8 + $0xd] sm:$0x1] %vm253_vm3, %v1267_v52 }
 0x3a2   :  { %1350 = vmatmul.f32.vlgmr.msrb.gmra.mxu1 %v1304_v53  ;;  %v1305_v54 = vsub.f32 %v1282_v15, %v1304_v53 }
 0x3a3   :  { %1600 = vmatpush.msrb.mxu1 %v1499_v59 }
 0x3a4   :  { %1380 = vmatmul.f32.vlgmr.msrb.gmra.mxu2 %v1305_v54  ;;  %v1306_v55 = vand.u32 4294901760, %v1305_v54 }
 0x3a5   :  { %1602 = vmatpush.msrb.mxu1 %v1501_v62  ;;  %1629 = vmatpush.msrb.mxu2 %v1530_v0 }
 0x3a6   :  { %1407 = vmatmul.f32.vlgmr.msrb.gmra.mxu3 %v1306_v55  ;;  %v1307_v56 = vsub.f32 %v1305_v54, %v1306_v55 }
 0x3a7   :  { %1604 = vmatpush.msrb.mxu1 %v1503_v2  ;;  %1633 = vmatpush.msrb.mxu2 %v1536_v8 }
 0x3a8   :  { %v1308_v57 = vand.u32 4294901760, %v1307_v56  ;;  %1660 = vmatpush.msrb.mxu3 %v1499_v59 }
 0x3a9   :  { %1606 = vmatpush.msrb.mxu1 %v1505_v14  ;;  %1637 = vmatpush.msrb.mxu2 %v1542_v22 }
 0x3aa   :  { %1309 = vmatmul.f32.vlgmr.msrb.gmra.mxu0 %v1308_v57  ;;  %1465 = vmatmul.f32.vlgmr.msra.gmra.mxu1 %v1304_v53 }
 0x3ab   :  { %1571 = vmatpush.msrb.mxu0 %v1529_v61  ;;  %1641 = vmatpush.msrb.mxu2 %v1548_v26 }
 0x3ac   :  { %1662 = vmatpush.msrb.mxu3 %v1501_v62 }
 0x3ad   :  { %1574 = vmatpush.msrb.mxu0 %v1535_v1 }
 0x3ae   :  { %1664 = vmatpush.msrb.mxu3 %v1503_v2 }
 0x3af   :  { %1577 = vmatpush.msrb.mxu0 %v1541_v10 }
 0x3b0   :  { %1666 = vmatpush.msrb.mxu3 %v1505_v14 }
 0x3b1   :  { %1580 = vmatpush.msrb.mxu0 %v1547_v23 }
 0x3b2   :  { %1440 = vmatmul.f32.vlgmr.msra.gmra.mxu0 %v1304_v53 }
 0x41f   :  { %v1351_v31 = vpop.f32.mrf.mxu1 }
 0x427   :  { %v1310_v35 = vpop.f32.mrf.mxu0  ;;  %v1381_v38 = vpop.f32.mrf.mxu2 }
 0x428   :  { %v1311_v36 = vadd.f32 %v1310_v35, %v1280_v34  ;;  %v1466_v44 = vpop.f32.mrf.mxu1 }
 0x429   :  { %v1408_v40 = vpop.f32.mrf.mxu3 }
 0x42a   :  { %v1352_v37 = vadd.f32 %v1351_v31, %v1311_v36 }
 0x42c   :  { %v1382_v39 = vadd.f32 %v1381_v38, %v1352_v37 }
 0x42e   :  { %v1409_v41 = vadd.f32 %v1408_v40, %v1382_v39 }
 0x42f   :  { %v1441_v42 = vpop.f32.mrf.mxu0 }
 0x430   :  { %v1442_v43 = vadd.f32 %v1441_v42, %v1409_v41 }
 0x432   :  { %v1467_v45 = vadd.f32 %v1466_v44, %v1442_v43 }
 0x434   :  { %v1470_v46 = vrot.slane %v1467_v45, 1  ;;  %1472 = vst.msk [vmem:[#allocation8 + $0x6] sm:$0x1] %vm253_vm3, %v1467_v45  ;;  %v1485_v4 = vsel %vm61_vm1, %v1467_v45, 0 }
 0x435   :  { %v1507_v5 = vand.u32 4294901760, %v1485_v4 }
 0x436   :  { %1473 = vst.msk [vmem:[#allocation8 + $0xe] sm:$0x1] %vm253_vm3, %v1470_v46 }
 0x437   :  { %1553 = vmatmul.f32.vlgmr.msra.gmra.mxu3 %v1507_v5  ;;  %v1508_v16 = vsub.f32 %v1485_v4, %v1507_v5 }
 0x439   :  { %1583 = vmatmul.f32.vlgmr.msrb.gmra.mxu0 %v1508_v16  ;;  %v1509_v11 = vand.u32 4294901760, %v1508_v16 }
 0x43b   :  { %1610 = vmatmul.f32.vlgmr.msrb.gmra.mxu1 %v1509_v11  ;;  %v1510_v17 = vsub.f32 %v1508_v16, %v1509_v11 }
 0x43d   :  { %v1511_v6 = vand.u32 4294901760, %v1510_v17 }
 0x43f   :  { %1512 = vmatmul.f32.vlgmr.msra.gmra.mxu2 %v1511_v6  ;;  %1668 = vmatmul.f32.vlgmr.msrb.gmra.mxu3 %v1507_v5 }
 0x447   :  { %1643 = vmatmul.f32.vlgmr.msrb.gmra.mxu2 %v1507_v5 }
 0x4b6   :  { %v1584_v51 = vpop.f32.mrf.mxu0 }
 0x4b8   :  { %v1611_v52 = vpop.f32.mrf.mxu1 }
 0x4ba   :  { %v1554_v49 = vpop.f32.mrf.mxu3 }
 0x4c2   :  { %v1513_v9 = vpop.f32.mrf.mxu2  ;;  %v1669_v55 = vpop.f32.mrf.mxu3 }
 0x4c3   :  { %v1514_v50 = vadd.f32 %v1513_v9, %v1483_v12 }
 0x4c5   :  { %v1555_v20 = vadd.f32 %v1554_v49, %v1514_v50 }
 0x4c7   :  { %v1585_v13 = vadd.f32 %v1584_v51, %v1555_v20 }
 0x4c9   :  { %v1612_v15 = vadd.f32 %v1611_v52, %v1585_v13 }
 0x4ca   :  { %v1644_v53 = vpop.f32.mrf.mxu2 }
 0x4cb   :  { %v1645_v54 = vadd.f32 %v1644_v53, %v1612_v15 }
 0x4cd   :  { %v1670_v56 = vadd.f32 %v1669_v55, %v1645_v54 }
 0x4cf   :  { %v1673_v57 = vrot.slane %v1670_v56, 1  ;;  %1675 = vst.msk [vmem:[#allocation8 + $0x7] sm:$0x1] %vm253_vm3, %v1670_v56 }
 0x4d0   :  { %1678 = vst.msk [vmem:[#allocation3] sm:$0x3] %vm43_vm0, %v1670_v56 }
 0x4d1   :  { %1676 = vst.msk [vmem:[#allocation8 + $0xf] sm:$0x1] %vm253_vm3, %v1673_v57 }
 0x4d2   :  { %1691 = dma.vmem_to_hbm [thread:$0]  %s1684_s20, 256, %s1686_s23, [#allocation7], %s1790_s14, %s1790_s14, %s1791_s15  }
 0x4d3   :  { %1787 = dma.done.wait [#allocation7], 256  }
 0x4d4   :  { %1788 = vsyncadd [#allocation7], 4294967040 }
 0x4d5   :  { %1696 = vsyncpa [#allocation6], 1 }
 0x4d6   :  { %1697 = vsyncpa [#allocation7], 1 }
 0x4d7   :  { %1698 = vsyncmov [#allocation4] }
 0x4da   :  { %s1699_s2 = vpop.sfrf %1698 }
 0x4db   :  { %p1704_p0 = scmp.ne.s32.totalorder %s1699_s2, 0 }
 0x4dd   :  { %1703 = shalt.err (%p1704_p0)  }

</bundles_post_ra>
